<compile_context>
chip_gen: v7x
topology: tpu7x:2x2x1
jax: 0.10.0
libtpu: 0.0.40
codegen_flags: <defaults>
</compile_context>

<pallas_src>
import functools

import jax
import jax.numpy as jnp
from jax.experimental import pallas as pl
from jax.experimental.pallas import tpu as pltpu

A_PAD = 128  # lane-dense padded action axis


# --------------------------------------------------------------------------- #
# Kernel
# --------------------------------------------------------------------------- #
def dueling_dqn_kernel(x_ref, w1_ref, w_ref, b_ref, q_ref):
    """One batch tile: q = relu-MLP with fused dueling head, all in vregs.

    x_ref : (bt, S)        f32   activations (cast to bf16 in-kernel)
    w1_ref: (S, 128)       bf16  first layer
    w_ref : (3, 128, 128)  bf16  [w2, fused head hidden w3, fused output wq]
    b_ref : (4, 128)       f32   rows: b1, b2, b3, bq
    q_ref : (bt, 128)      f32   padded Q (cols >= action_dim are 0.0)
    """
    bf16 = jnp.bfloat16
    f32 = jnp.float32

    x = x_ref[...].astype(bf16)          # cast in-kernel; MXU wants bf16 inputs
    b = b_ref[...]
    b1, b2, b3, bq = b[0:1, :], b[1:2, :], b[2:3, :], b[3:4, :]

    # fc_common: Linear(S,128)+ReLU, Linear(128,128)+ReLU
    h1 = jnp.maximum(
        jnp.dot(x, w1_ref[...], preferred_element_type=f32) + b1, 0.0)
    h2 = jnp.maximum(
        jnp.dot(h1.astype(bf16), w_ref[0], preferred_element_type=f32) + b2, 0.0)

    # fused value/advantage hidden layer:
    #   cols [0:64] = value-stream hidden, cols [64:128] = advantage-stream hidden
    h3 = jnp.maximum(
        jnp.dot(h2.astype(bf16), w_ref[1], preferred_element_type=f32) + b3, 0.0)

    # dueling combine (V + A - mean_a(A)) is folded into wq / bq
    q_ref[...] = jnp.dot(h3.astype(bf16), w_ref[2],
                         preferred_element_type=f32) + bq


# --------------------------------------------------------------------------- #
# Parameter packing (run ONCE per parameter update, outside the forward path)
# --------------------------------------------------------------------------- #
def pack_params(params, action_dim, *, compute_dtype=jnp.bfloat16):
    """Fold the dueling head into two full 128-wide matmuls and pack operands.

    Returns (w1, w_stack, biases):
      w1      : (S, 128)       compute_dtype
      w_stack : (3, 128, 128)  compute_dtype   [w2, w3=[wv1|wa1], wq]
      biases  : (4, 128)       f32             [b1; b2; b3; bq]
    """
    w1, b1 = params["w1"], params["b1"]
    w2, b2 = params["w2"], params["b2"]

    # fused head hidden layer
    w3 = jnp.concatenate([params["wv1"], params["wa1"]], axis=1)   # (128, 128)
    b3 = jnp.concatenate([params["bv1"], params["ba1"]], axis=1)   # (1, 128)

    # fused output layer with the advantage-mean folded in:
    #   q = V + A - mean_a(A)
    #     = hv @ wv2 (broadcast over A) + ha @ (wa2 - mean_a(wa2))
    #       + (bv2 + ba2 - mean_a(ba2))
    wv2_t = jnp.tile(params["wv2"], (1, action_dim))                        # (64, A)
    wa2_c = params["wa2"] - jnp.mean(params["wa2"], axis=1, keepdims=True)  # (64, A)
    wq = jnp.concatenate([wv2_t, wa2_c], axis=0)                            # (128, A)
    bq = params["bv2"] + params["ba2"] - jnp.mean(params["ba2"], axis=1,
                                                  keepdims=True)            # (1, A)

    # lane-dense output: pad action axis to 128 (padded Q columns are exactly 0)
    wq = jnp.pad(wq, ((0, 0), (0, A_PAD - action_dim)))
    bq = jnp.pad(bq, ((0, 0), (0, A_PAD - action_dim)))

    w1 = w1.astype(compute_dtype)
    w_stack = jnp.stack([w2, w3, wq]).astype(compute_dtype)                 # (3,128,128)
    biases = jnp.concatenate([b1, b2, b3, bq], axis=0).astype(jnp.float32)  # (4, 128)
    return w1, w_stack, biases


# --------------------------------------------------------------------------- #
# Chip-aware batch tiling
# --------------------------------------------------------------------------- #
def _tensorcores_per_chip():
    """2 on v7x-class chips (megacore grid sharding helps), else 1."""
    try:
        kind = jax.devices()[0].device_kind.lower()
    except Exception:
        return 1
    if "v7" in kind or "7x" in kind:
        return 2
    return 1


def _pick_batch_tile(B, ncores):
    # Cap tiles at 256: bigger tiles blow up live f32/bf16 intermediates vs the
    # 256 KiB vreg file -> spill traffic on the single vector-store slot.
    candidates = (256, 128, 64, 32, 16, 8)
    if ncores <= 1:
        # Single TensorCore: the grid is a sequential loop -> one step if possible.
        if B <= 256:
            return B
        for cand in candidates:
            if B % cand == 0:
                return cand
        return B
    # Multi-TC (v7x): prefer >= ncores big parallel tiles.
    for cand in candidates:
        if B % cand == 0 and B // cand >= ncores:
            return cand
    return B


# --------------------------------------------------------------------------- #
# Forward (jit-ted; packed weights are passed in, not recomputed per call)
# --------------------------------------------------------------------------- #
@functools.partial(jax.jit, static_argnames=("action_dim", "batch_tile"))
def _dueling_dqn_forward_impl(x, w1, w_stack, biases, *, action_dim, batch_tile):
    B, S = x.shape
    assert B % batch_tile == 0
    if batch_tile != B:
        # sublane alignment for f32 activation tiles
        assert batch_tile % 8 == 0, "batch_tile must be a multiple of 8"

    # Weights/biases: whole-array blocks with constant index_maps -> resident
    # in VMEM across the batch-tile grid.
    grid_spec = pltpu.PrefetchScalarGridSpec(
        num_scalar_prefetch=0,
        grid=(B // batch_tile,),
        in_specs=[
            pl.BlockSpec((batch_tile, S), lambda i: (i, 0)),
            pl.BlockSpec(w1.shape, lambda i: (0, 0)),
            pl.BlockSpec(w_stack.shape, lambda i: (0, 0, 0)),
            pl.BlockSpec(biases.shape, lambda i: (0, 0)),
        ],
        out_specs=pl.BlockSpec((batch_tile, A_PAD), lambda i: (i, 0)),
    )

    q_padded = pl.pallas_call(
        dueling_dqn_kernel,
        out_shape=jax.ShapeDtypeStruct((B, A_PAD), jnp.float32),
        grid_spec=grid_spec,
        compiler_params=pltpu.CompilerParams(
            dimension_semantics=("parallel",)),
    )(x, w1, w_stack, biases)

    # Padded lanes [action_dim:128] are exactly 0.0; slice them off here (fused
    # under jit).  Consumers doing argmax over the padded buffer must mask them.
    return q_padded[:, :action_dim]


def dueling_dqn_forward(x, packed, action_dim, *, batch_tile=None):
    """packed = pack_params(params, action_dim); call once per param update."""
    w1, w_stack, biases = packed
    if batch_tile is None:
        batch_tile = _pick_batch_tile(x.shape[0], _tensorcores_per_chip())
    return _dueling_dqn_forward_impl(x, w1, w_stack, biases,
                                     action_dim=action_dim,
                                     batch_tile=batch_tile)


# --------------------------------------------------------------------------- #
# Synthetic init + pure-JAX reference
# --------------------------------------------------------------------------- #
def init_params(key, state_dim, action_dim):
    """Deterministic synthetic init (shapes match the torch module)."""
    ks = jax.random.split(key, 12)

    def lin(kw, kb, fan_in, fan_out):
        bound = 1.0 / jnp.sqrt(fan_in)
        w = jax.random.uniform(kw, (fan_in, fan_out), jnp.float32, -bound, bound)
        b = jax.random.uniform(kb, (1, fan_out), jnp.float32, -bound, bound)
        return w, b

    p = {}
    p["w1"], p["b1"] = lin(ks[0], ks[1], state_dim, 128)
    p["w2"], p["b2"] = lin(ks[2], ks[3], 128, 128)
    p["wv1"], p["bv1"] = lin(ks[4], ks[5], 128, 64)
    p["wv2"], p["bv2"] = lin(ks[6], ks[7], 64, 1)
    p["wa1"], p["ba1"] = lin(ks[8], ks[9], 128, 64)
    p["wa2"], p["ba2"] = lin(ks[10], ks[11], 64, action_dim)
    return p


def dueling_dqn_ref(x, p):
    """Pure-JAX f32 reference matching the torch forward (unfused)."""
    h = jnp.maximum(x @ p["w1"] + p["b1"], 0.0)
    h = jnp.maximum(h @ p["w2"] + p["b2"], 0.0)
    v = jnp.maximum(h @ p["wv1"] + p["bv1"], 0.0) @ p["wv2"] + p["bv2"]
    a = jnp.maximum(h @ p["wa1"] + p["ba1"], 0.0) @ p["wa2"] + p["ba2"]
    return v + a - a.mean(axis=1, keepdims=True)


if __name__ == "__main__":
    key = jax.random.PRNGKey(0)
    k_x, k_p = jax.random.split(key)

    batch, state_dim, action_dim = 64, 16, 8
    x = jax.random.normal(k_x, (batch, state_dim), dtype=jnp.float32)
    params = init_params(k_p, state_dim, action_dim)

    # Pack once per parameter update (outside the latency-critical forward).
    packed = jax.block_until_ready(pack_params(params, action_dim))

    # batch_tile is chosen per chip: B (one grid step) on v5e/v6e, B//2 on v7x.
    q = dueling_dqn_forward(x, packed, action_dim)
    q = jax.block_until_ready(q)

    q_ref = dueling_dqn_ref(x, params)
    assert q.shape == (batch, action_dim)
    # bf16 MXU inputs + head-fusion reassociation -> relaxed tolerance vs f32 ref.
    assert jnp.allclose(q, q_ref, atol=5e-2, rtol=5e-2), (
        "mismatch vs reference, max abs err = "
        f"{float(jnp.max(jnp.abs(q - q_ref)))}")

    print("KERNEL_OK")
</pallas_src>

<mosaic_0001>
module attributes {stable_mosaic.version = 11 : i64} {
  func.func @dueling_dqn_kernel(%arg0: i32, %arg1: memref<64x16xf32, #tpu.memory_space<vmem>>, %arg2: memref<16x128xbf16, #tpu.memory_space<vmem>>, %arg3: memref<3x128x128xbf16, #tpu.memory_space<vmem>>, %arg4: memref<4x128xf32, #tpu.memory_space<vmem>>, %arg5: memref<64x128xf32, #tpu.memory_space<vmem>>) attributes {dimension_semantics = [#tpu.dimension_semantics<parallel>], iteration_bounds = array<i64: 1>, scalar_prefetch = 0 : i64, scratch_operands = 0 : i64, tpu.core_type = #tpu.core_type<tc>, window_params = [{transform_indices = @transform_0, window_bounds = array<i64: 64, 16>}, {pipeline_mode = #tpu.pipeline_mode<synchronous>, transform_indices = @transform_1, window_bounds = array<i64: 16, 128>}, {pipeline_mode = #tpu.pipeline_mode<synchronous>, transform_indices = @transform_2, window_bounds = array<i64: 3, 128, 128>}, {pipeline_mode = #tpu.pipeline_mode<synchronous>, transform_indices = @transform_3, window_bounds = array<i64: 4, 128>}, {transform_indices = @transform_4, window_bounds = array<i64: 64, 128>}]} {
    %c0 = arith.constant 0 : index
    %c0_0 = arith.constant 0 : index
    %0 = vector.load %arg1[%c0, %c0_0] : memref<64x16xf32, #tpu.memory_space<vmem>>, vector<64x16xf32>
    %1 = arith.truncf %0 : vector<64x16xf32> to vector<64x16xbf16>
    %c0_1 = arith.constant 0 : index
    %c0_2 = arith.constant 0 : index
    %2 = vector.load %arg4[%c0_1, %c0_2] : memref<4x128xf32, #tpu.memory_space<vmem>>, vector<4x128xf32>
    %3 = vector.extract_strided_slice %2 {offsets = [0, 0], sizes = [1, 128], strides = [1, 1]} : vector<4x128xf32> to vector<1x128xf32>
    %4 = vector.extract_strided_slice %2 {offsets = [1, 0], sizes = [1, 128], strides = [1, 1]} : vector<4x128xf32> to vector<1x128xf32>
    %5 = vector.extract_strided_slice %2 {offsets = [2, 0], sizes = [1, 128], strides = [1, 1]} : vector<4x128xf32> to vector<1x128xf32>
    %6 = vector.extract_strided_slice %2 {offsets = [3, 0], sizes = [1, 128], strides = [1, 1]} : vector<4x128xf32> to vector<1x128xf32>
    %c0_3 = arith.constant 0 : index
    %c0_4 = arith.constant 0 : index
    %7 = vector.load %arg2[%c0_3, %c0_4] : memref<16x128xbf16, #tpu.memory_space<vmem>>, vector<16x128xbf16>
    %cst = arith.constant dense<0.000000e+00> : vector<64x128xf32>
    %8 = tpu.matmul %1, %7, %cst {dimension_numbers = #tpu.dot_dimension_numbers<[1], [0], [0], [1], [0, 0, 1, 1], [], []>} : vector<64x16xbf16>, vector<16x128xbf16>, vector<64x128xf32> -> vector<64x128xf32>
    %9 = vector.broadcast %3 : vector<1x128xf32> to vector<64x128xf32>
    %10 = arith.addf %8, %9 : vector<64x128xf32>
    %cst_5 = arith.constant 0.000000e+00 : f32
    %11 = vector.broadcast %cst_5 : f32 to vector<64x128xf32>
    %12 = arith.maximumf %10, %11 : vector<64x128xf32>
    %13 = arith.truncf %12 : vector<64x128xf32> to vector<64x128xbf16>
    %c0_6 = arith.constant 0 : index
    %c0_7 = arith.constant 0 : index
    %c0_8 = arith.constant 0 : index
    %14 = vector.load %arg3[%c0_6, %c0_7, %c0_8] : memref<3x128x128xbf16, #tpu.memory_space<vmem>>, vector<1x128x128xbf16>
    %15 = vector.shape_cast %14 : vector<1x128x128xbf16> to vector<128x128xbf16>
    %cst_9 = arith.constant dense<0.000000e+00> : vector<64x128xf32>
    %16 = tpu.matmul %13, %15, %cst_9 {dimension_numbers = #tpu.dot_dimension_numbers<[1], [0], [0], [1], [0, 0, 1, 1], [], []>} : vector<64x128xbf16>, vector<128x128xbf16>, vector<64x128xf32> -> vector<64x128xf32>
    %17 = vector.broadcast %4 : vector<1x128xf32> to vector<64x128xf32>
    %18 = arith.addf %16, %17 : vector<64x128xf32>
    %cst_10 = arith.constant 0.000000e+00 : f32
    %19 = vector.broadcast %cst_10 : f32 to vector<64x128xf32>
    %20 = arith.maximumf %18, %19 : vector<64x128xf32>
    %21 = arith.truncf %20 : vector<64x128xf32> to vector<64x128xbf16>
    %c1 = arith.constant 1 : index
    %c0_11 = arith.constant 0 : index
    %c0_12 = arith.constant 0 : index
    %22 = vector.load %arg3[%c1, %c0_11, %c0_12] : memref<3x128x128xbf16, #tpu.memory_space<vmem>>, vector<1x128x128xbf16>
    %23 = vector.shape_cast %22 : vector<1x128x128xbf16> to vector<128x128xbf16>
    %cst_13 = arith.constant dense<0.000000e+00> : vector<64x128xf32>
    %24 = tpu.matmul %21, %23, %cst_13 {dimension_numbers = #tpu.dot_dimension_numbers<[1], [0], [0], [1], [0, 0, 1, 1], [], []>} : vector<64x128xbf16>, vector<128x128xbf16>, vector<64x128xf32> -> vector<64x128xf32>
    %25 = vector.broadcast %5 : vector<1x128xf32> to vector<64x128xf32>
    %26 = arith.addf %24, %25 : vector<64x128xf32>
    %cst_14 = arith.constant 0.000000e+00 : f32
    %27 = vector.broadcast %cst_14 : f32 to vector<64x128xf32>
    %28 = arith.maximumf %26, %27 : vector<64x128xf32>
    %29 = arith.truncf %28 : vector<64x128xf32> to vector<64x128xbf16>
    %c2 = arith.constant 2 : index
    %c0_15 = arith.constant 0 : index
    %c0_16 = arith.constant 0 : index
    %30 = vector.load %arg3[%c2, %c0_15, %c0_16] : memref<3x128x128xbf16, #tpu.memory_space<vmem>>, vector<1x128x128xbf16>
    %31 = vector.shape_cast %30 : vector<1x128x128xbf16> to vector<128x128xbf16>
    %cst_17 = arith.constant dense<0.000000e+00> : vector<64x128xf32>
    %32 = tpu.matmul %29, %31, %cst_17 {dimension_numbers = #tpu.dot_dimension_numbers<[1], [0], [0], [1], [0, 0, 1, 1], [], []>} : vector<64x128xbf16>, vector<128x128xbf16>, vector<64x128xf32> -> vector<64x128xf32>
    %33 = vector.broadcast %6 : vector<1x128xf32> to vector<64x128xf32>
    %34 = arith.addf %32, %33 : vector<64x128xf32>
    %c0_18 = arith.constant 0 : index
    %c0_19 = arith.constant 0 : index
    %35 = vector.load %arg5[%c0_18, %c0_19] : memref<64x128xf32, #tpu.memory_space<vmem>>, vector<64x128xf32>
    tpu.vector_store %arg5[%c0_18, %c0_19], %34 {strides = array<i32>} : memref<64x128xf32, #tpu.memory_space<vmem>>, vector<64x128xf32>,
    return
  }
  func.func @transform_0(%arg0: i32) -> (i32, i32) {
    %c0_i32 = arith.constant 0 : i32
    %c0_i32_0 = arith.constant 0 : i32
    return %arg0, %c0_i32 : i32, i32
  }
  func.func @transform_1(%arg0: i32) -> (i32, i32) {
    %c0_i32 = arith.constant 0 : i32
    %c0_i32_0 = arith.constant 0 : i32
    %c0_i32_1 = arith.constant 0 : i32
    return %c0_i32, %c0_i32_0 : i32, i32
  }
  func.func @transform_2(%arg0: i32) -> (i32, i32, i32) {
    %c0_i32 = arith.constant 0 : i32
    %c0_i32_0 = arith.constant 0 : i32
    %c0_i32_1 = arith.constant 0 : i32
    %c0_i32_2 = arith.constant 0 : i32
    return %c0_i32, %c0_i32_0, %c0_i32_1 : i32, i32, i32
  }
  func.func @transform_3(%arg0: i32) -> (i32, i32) {
    %c0_i32 = arith.constant 0 : i32
    %c0_i32_0 = arith.constant 0 : i32
    %c0_i32_1 = arith.constant 0 : i32
    return %c0_i32, %c0_i32_0 : i32, i32
  }
  func.func @transform_4(%arg0: i32) -> (i32, i32) {
    %c0_i32 = arith.constant 0 : i32
    %c0_i32_0 = arith.constant 0 : i32
    return %arg0, %c0_i32 : i32, i32
  }
}

</mosaic_0001>

<bundles_post_ra>
// kernel: _dueling_dqn_forward_impl.1
= control target key start
LH: loop header
LB: loop body
LE: loop exit
PB: predicated region body
PF: predicated region fallthrough
CT: control target
= control target key end

     0   :  { %9 = vsyncpa [#allocation3], 0  ;;  %s805_s15 = smov [#allocation2]   ;;  %s915_s0 = inlined_call_operand.vmem [shape: f32[64,16], index: 0, kind: input, shape index: {}]   ;;  %s916_s1 = inlined_call_operand.vmem [shape: bf16[16,128], index: 1, kind: input, shape index: {}]   ;;  %s917_s2 = inlined_call_operand.hbm [shape: bf16[3,128,128], index: 2, kind: input, shape index: {}]   ;;  %s918_s3 = inlined_call_operand.vmem [shape: f32[4,128], index: 3, kind: input, shape index: {}]   ;;  %s919_s4 = inlined_call_operand.vmem [shape: f32[64,128], index: 4, kind: output, shape index: {}]  }
   0x1   :  { %s19_s16 = sshll.u32 %s805_s15, 4  ;;  %s781_s19 = scalar_lea.hbm %s917_s2, 3072  ;;  %s20_s16 = int_to_ptr.vmem [resolvable:$true] %s19_s16 }
   0x2   :  { %p782_p0 = scmp.ne.s32.totalorder %s917_s2, %s781_s19  ;;  %p785_p1 = scmp.lt.u32.totalorder %s781_s19, %s917_s2 }
   0x4   :  { %p787_p2 = pnand %p785_p1, %p782_p0 }
   0x6   :  { %790 = shalt.err (!%p787_p2)
}
   0x7   :  { %s791_s24 = scalar_lea.vmem %s20_s16, 3072  ;;  %p796_p4 = scmp.lt.s32.totalorder %s20_s16, %s20_s16 }
   0x8   :  { %p792_p3 = scmp.ne.s32.totalorder %s20_s16, %s791_s24  ;;  %p797_p5 = scmp.lt.s32.totalorder %s791_s24, %s791_s24 }
   0xa   :  { %p798_p6 = por %p797_p5, %p796_p4 }
   0xc   :  { %p799_p7 = pnand %p798_p6, %p792_p3 }
   0xe   :  { %802 = shalt.err (!%p799_p7)
}
   0xf   :  { %s806_s25 = smov 64   ;;  %s807_s26 = smov 4  }
  0x10   :  { %25 = dma.hbm_to_vmem [thread:$0]  %s917_s2, 3072, %s20_s16, [#allocation3], %s806_s25, %s806_s25, %s807_s26  }
  0x11   :  { %803 = dma.done.wait [#allocation3], 3072  }
  0x12   :  { %804 = vsyncadd [#allocation3], 4294964224  ;;  %v756_v0 = vld [vmem:[%s916_s1] sm:$0xff]   ;;  %v33_v2 = vld [vmem:[%s915_s0 + $0x8] sm:$0xff]  ;;  %vm57_vm0 = vcmask 130048   ;;  %v47_v27 = vlaneseq }
  0x13   :  { %v32_v1 = vld [vmem:[%s915_s0] sm:$0xff]  ;;  %v34_v3 = vld [vmem:[%s915_s0 + $0x10] sm:$0xff]  ;;  %655 = vmatprep.subr.bf16.mxu0 %v756_v0  ;;  %v35_v5 = vld [vmem:[%s915_s0 + $0x18] sm:$0xff] }
  0x14   :  { %v40_v4 = vpack.c.bf16 %v33_v2, %v32_v1  ;;  %v36_v6 = vld [vmem:[%s915_s0 + $0x20] sm:$0xff]  ;;  %v37_v7 = vld [vmem:[%s915_s0 + $0x28] sm:$0xff]  ;;  %656 = vmatpush3.bf16.msra.mxu0 %v756_v0  ;;  %v41_v8 = vpack.c.bf16 %v35_v5, %v34_v3  ;;  %v38_v12 = vld [vmem:[%s915_s0 + $0x30] sm:$0xff]  ;;  %v876_v28 = vshrl.u32 %v47_v27, 7 }
  0x15   :  { %v42_v9 = vpack.c.bf16 %v37_v7, %v36_v6  ;;  %v757_v10 = vld [vmem:[#allocation2] sm:$0xff]   ;;  %v758_v11 = vld [vmem:[#allocation2 + $0x8] sm:$0xff]   ;;  %v39_v13 = vld [vmem:[%s915_s0 + $0x38] sm:$0xff] }
  0x16   :  { %657 = vmatprep.mubr.msk.bf16.mxu0 %vm57_vm0, %v40_v4  ;;  %665 = vmatprep.subr.bf16.mxu1 %v757_v10  ;;  %v759_v14 = vld [vmem:[#allocation2 + $0x10] sm:$0xff]   ;;  %v43_v15 = vpack.c.bf16 %v39_v13, %v38_v12  ;;  %v760_v16 = vld [vmem:[#allocation2 + $0x18] sm:$0xff]   ;;  %v761_v17 = vld [vmem:[#allocation2 + $0x20] sm:$0xff]   ;;  %v49_v29 = vsub.s32 0, %v876_v28  ;;  %v165_v4 = vsub.s32 1, %v876_v28 }
  0x17   :  { %658 = vmatmul.mubr.msk.bf16.vlgmr.msra.gmra.mrb[0].mxu0 %vm57_vm0, %v41_v8  ;;  %666 = vmatpush3.bf16.msra.mxu1 %v757_v10  ;;  %v762_v18 = vld [vmem:[#allocation2 + $0x28] sm:$0xff]   ;;  %v763_v19 = vld [vmem:[#allocation2 + $0x30] sm:$0xff]   ;;  %v764_v20 = vld [vmem:[#allocation2 + $0x38] sm:$0xff]  }
  0x18   :  { %661 = vmatprep.mubr.msk.bf16.mxu0 %vm57_vm0, %v42_v9  ;;  %667 = vmatprep.subr.bf16.mxu1 %v758_v11  ;;  %v765_v21 = vld [vmem:[#allocation2 + $0x40] sm:$0xff]   ;;  %v766_v22 = vld [vmem:[#allocation2 + $0x48] sm:$0xff]   ;;  %v767_v23 = vld [vmem:[#allocation2 + $0x50] sm:$0xff]  }
  0x19   :  { %689 = vmatprep.subr.bf16.mxu0 %v765_v21  ;;  %v768_v24 = vld [vmem:[#allocation2 + $0x58] sm:$0xff]   ;;  %v769_v25 = vld [vmem:[#allocation2 + $0x60] sm:$0xff]   ;;  %v770_v26 = vld [vmem:[#allocation2 + $0x68] sm:$0xff]  }
  0x1a   :  { %690 = vmatpush3.bf16.msra.mxu0 %v765_v21  ;;  %v882_v30 = vld [vmem:[%s918_s3] sm:$0xf]  ;;  %v771_v60 = vld [vmem:[#allocation2 + $0x70] sm:$0xff]   ;;  %v772_v61 = vld [vmem:[#allocation2 + $0x78] sm:$0xff]  }
  0x1b   :  { %668 = vmatpush3.bf16.msra.mxu1 %v758_v11  ;;  %691 = vmatprep.subr.bf16.mxu0 %v766_v22  ;;  %v50_v31 = vrot.slane %v882_v30, %v49_v29  ;;  %v773_v62 = vld [vmem:[#allocation2 + $0x80] sm:$0xff]   ;;  %v774_v63 = vld [vmem:[#allocation2 + $0x88] sm:$0xff]   ;;  %v775_v0 = vld [vmem:[#allocation2 + $0x90] sm:$0xff]   ;;  %v166_v5 = vrot.slane %v882_v30, %v165_v4  ;;  %v457_v4 = vsub.s32 3, %v876_v28 }
  0x1c   :  { %669 = vmatprep.subr.bf16.mxu1 %v759_v14  ;;  %v776_v1 = vld [vmem:[#allocation2 + $0x98] sm:$0xff]   ;;  %v777_v2 = vld [vmem:[#allocation2 + $0xa0] sm:$0xff]   ;;  %v778_v3 = vld [vmem:[#allocation2 + $0xa8] sm:$0xff]  }
  0x1e   :  { %692 = vmatpush3.bf16.msra.mxu0 %v766_v22 }
  0x1f   :  { %662 = vmatmul.mubr.msk.bf16.gmra.mrb[4].mxu0 %vm57_vm0, %v43_v15  ;;  %670 = vmatpush3.bf16.msra.mxu1 %v759_v14 }
  0x20   :  { %671 = vmatprep.subr.bf16.mxu1 %v760_v16  ;;  %693 = vmatprep.subr.bf16.mxu0 %v767_v23 }
  0x22   :  { %694 = vmatpush3.bf16.msra.mxu0 %v767_v23 }
  0x23   :  { %672 = vmatpush3.bf16.msra.mxu1 %v760_v16  ;;  %695 = vmatprep.subr.bf16.mxu0 %v768_v24 }
  0x24   :  { %673 = vmatprep.subr.bf16.mxu1 %v761_v17 }
  0x26   :  { %696 = vmatpush3.bf16.msra.mxu0 %v768_v24 }
  0x27   :  { %674 = vmatpush3.bf16.msra.mxu1 %v761_v17  ;;  %697 = vmatprep.subr.bf16.mxu0 %v769_v25 }
  0x28   :  { %675 = vmatprep.subr.bf16.mxu1 %v762_v18 }
  0x2a   :  { %698 = vmatpush3.bf16.msra.mxu0 %v769_v25 }
  0x2b   :  { %676 = vmatpush3.bf16.msra.mxu1 %v762_v18  ;;  %699 = vmatprep.subr.bf16.mxu0 %v770_v26 }
  0x2c   :  { %677 = vmatprep.subr.bf16.mxu1 %v763_v19 }
  0x2e   :  { %700 = vmatpush3.bf16.msra.mxu0 %v770_v26 }
  0x2f   :  { %678 = vmatpush3.bf16.msra.mxu1 %v763_v19  ;;  %701 = vmatprep.subr.bf16.mxu0 %v771_v60 }
  0x30   :  { %679 = vmatprep.subr.bf16.mxu1 %v764_v20 }
  0x32   :  { %702 = vmatpush3.bf16.msra.mxu0 %v771_v60 }
  0x33   :  { %680 = vmatpush3.bf16.msra.mxu1 %v764_v20  ;;  %703 = vmatprep.subr.bf16.mxu0 %v772_v61 }
  0x34   :  { %737 = vmatprep.subr.bf16.mxu1 %v773_v62 }
  0x36   :  { %704 = vmatpush3.bf16.msra.mxu0 %v772_v61 }
  0x37   :  { %713 = vmatprep.subr.bf16.mxu0 %v773_v62 }
  0xea   :  { %v659_v32 = vpop.f32.mrb[0].mxu0 }
  0xeb   :  { %v113_v33 = vadd.f32 %v659_v32, %v50_v31  ;;  %v104_v34 = vpop.f32.mrb[1].mxu0 }
  0xec   :  { %v105_v35 = vadd.f32 %v104_v34, %v50_v31  ;;  %v660_v36 = vpop.f32.mrb[2].mxu0 }
  0xed   :  { %v116_v37 = vadd.f32 %v660_v36, %v50_v31  ;;  %v107_v38 = vpop.f32.mrb[3].mxu0  ;;  %v137_v40 = vmax.f32 %v113_v33, 0.0  ;;  %v779_v36 = vld [vmem:[#allocation2 + $0xb0] sm:$0xff]  }
  0xee   :  { %v108_v39 = vadd.f32 %v107_v38, %v50_v31  ;;  %v135_v42 = vmax.f32 %v105_v35, 0.0  ;;  %v311_v38 = vsub.s32 2, %v876_v28 }
  0xef   :  { %v138_v41 = vmax.f32 %v116_v37, 0.0  ;;  %v780_v37 = vld [vmem:[#allocation2 + $0xb8] sm:$0xff]  }
  0xf0   :  { %v136_v43 = vmax.f32 %v108_v39, 0.0  ;;  %v312_v39 = vrot.slane %v882_v30, %v311_v38 }
  0xf1   :  { %v144_v44 = vpack.c.bf16 %v138_v41, %v137_v40 }
  0xf2   :  { %v663_v45 = vpop.f32.mrb[4].mxu0  ;;  %v143_v46 = vpack.c.bf16 %v136_v43, %v135_v42 }
  0xf3   :  { %v129_v47 = vadd.f32 %v663_v45, %v50_v31  ;;  %v120_v48 = vpop.f32.mrb[5].mxu0 }
  0xf4   :  { %v121_v49 = vadd.f32 %v120_v48, %v50_v31  ;;  %v664_v50 = vpop.f32.mrb[6].mxu0  ;;  %681 = vmatprep.mubr.bf16.mxu1 %v143_v46 }
  0xf5   :  { %v132_v51 = vadd.f32 %v664_v50, %v50_v31  ;;  %v123_v52 = vpop.f32.mrb[7].mxu0  ;;  %682 = vmatmul.mubr.bf16.vlgmr.msra.gmra.mrb[0].mxu1 %v144_v44  ;;  %v141_v54 = vmax.f32 %v129_v47, 0.0 }
  0xf6   :  { %v124_v53 = vadd.f32 %v123_v52, %v50_v31  ;;  %v139_v56 = vmax.f32 %v121_v49, 0.0  ;;  %745 = vmatpush3.bf16.msra.mxu1 %v773_v62 }
  0xf7   :  { %v142_v55 = vmax.f32 %v132_v51, 0.0  ;;  %738 = vmatprep.subr.bf16.mxu1 %v774_v63 }
  0xf8   :  { %v140_v57 = vmax.f32 %v124_v53, 0.0 }
  0xf9   :  { %v146_v58 = vpack.c.bf16 %v142_v55, %v141_v54 }
  0xfa   :  { %v145_v59 = vpack.c.bf16 %v140_v57, %v139_v56  ;;  %746 = vmatpush3.bf16.msra.mxu1 %v774_v63 }
  0xfb   :  { %739 = vmatprep.subr.bf16.mxu1 %v775_v0 }
  0xfc   :  { %685 = vmatprep.mubr.bf16.mxu1 %v145_v59 }
  0xfd   :  { %686 = vmatmul.mubr.bf16.gmra.mrb[4].mxu1 %v146_v58 }
  0xfe   :  { %747 = vmatpush3.bf16.msra.mxu1 %v775_v0 }
  0xff   :  { %740 = vmatprep.subr.bf16.mxu1 %v776_v1 }
 0x102   :  { %748 = vmatpush3.bf16.msra.mxu1 %v776_v1 }
 0x103   :  { %741 = vmatprep.subr.bf16.mxu1 %v777_v2 }
 0x106   :  { %749 = vmatpush3.bf16.msra.mxu1 %v777_v2 }
 0x107   :  { %742 = vmatprep.subr.bf16.mxu1 %v778_v3 }
 0x10a   :  { %750 = vmatpush3.bf16.msra.mxu1 %v778_v3 }
 0x10b   :  { %743 = vmatprep.subr.bf16.mxu1 %v779_v36 }
 0x10e   :  { %751 = vmatpush3.bf16.msra.mxu1 %v779_v36 }
 0x10f   :  { %744 = vmatprep.subr.bf16.mxu1 %v780_v37 }
 0x112   :  { %752 = vmatpush3.bf16.msra.mxu1 %v780_v37 }
 0x1c8   :  { %v683_v6 = vpop.f32.mrb[0].mxu1 }
 0x1c9   :  { %v258_v7 = vadd.f32 %v683_v6, %v166_v5  ;;  %v249_v8 = vpop.f32.mrb[1].mxu1 }
 0x1ca   :  { %v250_v9 = vadd.f32 %v249_v8, %v166_v5  ;;  %v684_v10 = vpop.f32.mrb[2].mxu1 }
 0x1cb   :  { %v261_v11 = vadd.f32 %v684_v10, %v166_v5  ;;  %v252_v12 = vpop.f32.mrb[3].mxu1  ;;  %v282_v14 = vmax.f32 %v258_v7, 0.0 }
 0x1cc   :  { %v253_v13 = vadd.f32 %v252_v12, %v166_v5  ;;  %v280_v16 = vmax.f32 %v250_v9, 0.0 }
 0x1cd   :  { %v283_v15 = vmax.f32 %v261_v11, 0.0 }
 0x1ce   :  { %v281_v17 = vmax.f32 %v253_v13, 0.0 }
 0x1cf   :  { %v289_v18 = vpack.c.bf16 %v283_v15, %v282_v14 }
 0x1d0   :  { %v288_v19 = vpack.c.bf16 %v281_v17, %v280_v16  ;;  %v687_v20 = vpop.f32.mrb[4].mxu1 }
 0x1d1   :  { %v274_v21 = vadd.f32 %v687_v20, %v166_v5  ;;  %v265_v22 = vpop.f32.mrb[5].mxu1 }
 0x1d2   :  { %v266_v23 = vadd.f32 %v265_v22, %v166_v5  ;;  %v688_v24 = vpop.f32.mrb[6].mxu1  ;;  %705 = vmatprep.mubr.bf16.mxu0 %v288_v19 }
 0x1d3   :  { %v277_v25 = vadd.f32 %v688_v24, %v166_v5  ;;  %v268_v26 = vpop.f32.mrb[7].mxu1  ;;  %706 = vmatmul.mubr.bf16.vlgmr.msra.gmra.mrb[8].mxu0 %v289_v18  ;;  %v286_v29 = vmax.f32 %v274_v21, 0.0 }
 0x1d4   :  { %v269_v27 = vadd.f32 %v268_v26, %v166_v5  ;;  %714 = vmatpush3.bf16.msra.mxu0 %v773_v62  ;;  %v284_v32 = vmax.f32 %v266_v23, 0.0  ;;  %v458_v5 = vrot.slane %v882_v30, %v457_v4 }
 0x1d5   :  { %v287_v31 = vmax.f32 %v277_v25, 0.0  ;;  %715 = vmatprep.subr.bf16.mxu0 %v774_v63 }
 0x1d6   :  { %v285_v33 = vmax.f32 %v269_v27, 0.0 }
 0x1d7   :  { %v291_v34 = vpack.c.bf16 %v287_v31, %v286_v29 }
 0x1d8   :  { %v290_v35 = vpack.c.bf16 %v285_v33, %v284_v32  ;;  %716 = vmatpush3.bf16.msra.mxu0 %v774_v63 }
 0x1d9   :  { %717 = vmatprep.subr.bf16.mxu0 %v775_v0 }
 0x1da   :  { %709 = vmatprep.mubr.bf16.mxu0 %v290_v35 }
 0x1db   :  { %710 = vmatmul.mubr.bf16.gmra.mrb[12].mxu0 %v291_v34 }
 0x1dc   :  { %718 = vmatpush3.bf16.msra.mxu0 %v775_v0 }
 0x1dd   :  { %719 = vmatprep.subr.bf16.mxu0 %v776_v1 }
 0x1e0   :  { %720 = vmatpush3.bf16.msra.mxu0 %v776_v1 }
 0x1e1   :  { %721 = vmatprep.subr.bf16.mxu0 %v777_v2 }
 0x1e4   :  { %722 = vmatpush3.bf16.msra.mxu0 %v777_v2 }
 0x1e5   :  { %723 = vmatprep.subr.bf16.mxu0 %v778_v3 }
 0x1e8   :  { %724 = vmatpush3.bf16.msra.mxu0 %v778_v3 }
 0x1e9   :  { %725 = vmatprep.subr.bf16.mxu0 %v779_v36 }
 0x1ec   :  { %726 = vmatpush3.bf16.msra.mxu0 %v779_v36 }
 0x1ed   :  { %727 = vmatprep.subr.bf16.mxu0 %v780_v37 }
 0x1f0   :  { %728 = vmatpush3.bf16.msra.mxu0 %v780_v37 }
 0x2a6   :  { %v707_v40 = vpop.f32.mrb[8].mxu0 }
 0x2a7   :  { %v404_v41 = vadd.f32 %v707_v40, %v312_v39  ;;  %v395_v42 = vpop.f32.mrb[9].mxu0 }
 0x2a8   :  { %v396_v43 = vadd.f32 %v395_v42, %v312_v39  ;;  %v708_v44 = vpop.f32.mrb[10].mxu0 }
 0x2a9   :  { %v407_v45 = vadd.f32 %v708_v44, %v312_v39  ;;  %v398_v46 = vpop.f32.mrb[11].mxu0  ;;  %v428_v48 = vmax.f32 %v404_v41, 0.0 }
 0x2aa   :  { %v399_v47 = vadd.f32 %v398_v46, %v312_v39  ;;  %v426_v50 = vmax.f32 %v396_v43, 0.0 }
 0x2ab   :  { %v429_v49 = vmax.f32 %v407_v45, 0.0 }
 0x2ac   :  { %v427_v51 = vmax.f32 %v399_v47, 0.0 }
 0x2ad   :  { %v435_v52 = vpack.c.bf16 %v429_v49, %v428_v48 }
 0x2ae   :  { %v434_v53 = vpack.c.bf16 %v427_v51, %v426_v50  ;;  %v711_v54 = vpop.f32.mrb[12].mxu0 }
 0x2af   :  { %v420_v55 = vadd.f32 %v711_v54, %v312_v39  ;;  %v411_v56 = vpop.f32.mrb[13].mxu0 }
 0x2b0   :  { %v412_v57 = vadd.f32 %v411_v56, %v312_v39  ;;  %v712_v58 = vpop.f32.mrb[14].mxu0  ;;  %729 = vmatprep.mubr.bf16.mxu0 %v434_v53 }
 0x2b1   :  { %v423_v59 = vadd.f32 %v712_v58, %v312_v39  ;;  %v414_v60 = vpop.f32.mrb[15].mxu0  ;;  %730 = vmatmul.mubr.bf16.vlgmr.msra.gmra.mrb[16].mxu0 %v435_v52  ;;  %v432_v62 = vmax.f32 %v420_v55, 0.0 }
 0x2b2   :  { %v415_v61 = vadd.f32 %v414_v60, %v312_v39  ;;  %v430_v0 = vmax.f32 %v412_v57, 0.0 }
 0x2b3   :  { %v433_v63 = vmax.f32 %v423_v59, 0.0 }
 0x2b4   :  { %v431_v1 = vmax.f32 %v415_v61, 0.0 }
 0x2b5   :  { %v437_v2 = vpack.c.bf16 %v433_v63, %v432_v62 }
 0x2b6   :  { %v436_v3 = vpack.c.bf16 %v431_v1, %v430_v0 }
 0x2b8   :  { %733 = vmatprep.mubr.bf16.mxu1 %v436_v3 }
 0x2b9   :  { %734 = vmatmul.mubr.bf16.vlgmr.msra.gmra.mrb[8].mxu1 %v437_v2 }
 0x384   :  { %v731_v6 = vpop.f32.mrb[16].mxu0 }
 0x385   :  { %v550_v7 = vadd.f32 %v731_v6, %v458_v5  ;;  %v541_v8 = vpop.f32.mrb[17].mxu0 }
 0x386   :  { %v542_v9 = vadd.f32 %v541_v8, %v458_v5  ;;  %v732_v10 = vpop.f32.mrb[18].mxu0 }
 0x387   :  { %574 = vst [vmem:[%s919_s4 + $0x10] sm:$0xff] %v550_v7  ;;  %v553_v11 = vadd.f32 %v732_v10, %v458_v5  ;;  %v544_v12 = vpop.f32.mrb[19].mxu0 }
 0x388   :  { %572 = vst [vmem:[%s919_s4] sm:$0xff] %v542_v9  ;;  %v545_v13 = vadd.f32 %v544_v12, %v458_v5 }
 0x389   :  { %575 = vst [vmem:[%s919_s4 + $0x18] sm:$0xff] %v553_v11 }
 0x38a   :  { %573 = vst [vmem:[%s919_s4 + $0x8] sm:$0xff] %v545_v13 }
 0x38c   :  { %v735_v28 = vpop.f32.mrb[8].mxu1 }
 0x38d   :  { %v566_v30 = vadd.f32 %v735_v28, %v458_v5  ;;  %v557_v14 = vpop.f32.mrb[9].mxu1 }
 0x38e   :  { %v558_v15 = vadd.f32 %v557_v14, %v458_v5  ;;  %v736_v16 = vpop.f32.mrb[10].mxu1 }
 0x38f   :  { %578 = vst [vmem:[%s919_s4 + $0x30] sm:$0xff] %v566_v30  ;;  %v569_v17 = vadd.f32 %v736_v16, %v458_v5  ;;  %v560_v18 = vpop.f32.mrb[11].mxu1 }
 0x390   :  { %576 = vst [vmem:[%s919_s4 + $0x20] sm:$0xff] %v558_v15  ;;  %v561_v19 = vadd.f32 %v560_v18, %v458_v5 }
 0x391   :  { %579 = vst [vmem:[%s919_s4 + $0x38] sm:$0xff] %v569_v17 }
 0x392   :  { %577 = vst [vmem:[%s919_s4 + $0x28] sm:$0xff] %v561_v19 }
 0x393   :  { %584 = vsyncpa [#allocation3], 1 }

</bundles_post_ra>
